<compile_context>
chip_gen: v6e
topology: v6e:2x2x1
jax: 0.10.0
libtpu: 0.0.40
codegen_flags: <defaults>
</compile_context>

<pallas_src>
import jax
import jax.numpy as jnp
from jax.experimental import pallas as pl
from jax.experimental.pallas import tpu as pltpu

# MLP: 256 -> 128 -> 64 -> 32 -> 16 -> 2, ReLU between all but the last layer.
DIMS = [256, 128, 64, 32, 16, 2]
OUT_PAD = 128  # pad final output width 2 -> 128 lanes for lane-dense stores


def _round_up(n, m):
    return ((n + m - 1) // m) * m


def mlp_kernel(x_ref,
               w1_ref, b1_ref,
               w2_ref, b2_ref,
               w3_ref, b3_ref,
               w4_ref, b4_ref,
               w5_ref, b5_ref,
               o_ref):
    # Whole hot path (5 matmuls + bias + ReLU) runs in VMEM on the MXU/VPU.
    # bf16 operands on the MXU, f32 accumulation / elementwise.
    h = x_ref[...]  # bf16 (tile_m, 256)
    for w_ref, b_ref in ((w1_ref, b1_ref), (w2_ref, b2_ref),
                         (w3_ref, b3_ref), (w4_ref, b4_ref)):
        h = jnp.dot(h, w_ref[...], preferred_element_type=jnp.float32) + b_ref[...]
        h = jnp.maximum(h, 0.0).astype(jnp.bfloat16)
    # Final layer: padded to 128 output lanes (cols >= 2 are exact zeros).
    h = jnp.dot(h, w5_ref[...], preferred_element_type=jnp.float32) + b5_ref[...]
    o_ref[...] = h.astype(o_ref.dtype)


def feature_linear_layer(x, params, *, tile_m=1024):
    """x: (B, 256) float array.  params: list of (W (in,out) , b (1,out)) in f32.

    Returns (B, 2) float32.  Handles arbitrary B by zero-padding to a tile
    multiple (padded rows are sliced away)."""
    B, D_in = x.shape
    assert D_in == DIMS[0]
    n_layers = len(params)
    assert n_layers == len(DIMS) - 1

    # Tile size: as large as useful, multiple of 16 (bf16 sublane packing),
    # no larger than the (rounded-up) batch.
    tm = int(min(tile_m, _round_up(B, 16)))
    tm = max(16, (tm // 16) * 16)
    B_pad = _round_up(B, tm)
    grid = B_pad // tm

    # Stream x as bf16 (halves the HBM read traffic that bounds this kernel).
    x_bf16 = x.astype(jnp.bfloat16)
    if B_pad != B:
        x_bf16 = jnp.pad(x_bf16, ((0, B_pad - B), (0, 0)))

    flat_params = []
    in_specs = [pl.BlockSpec((tm, DIMS[0]), lambda i: (i, 0))]
    for li, (w, b) in enumerate(params):
        w = w.astype(jnp.bfloat16)           # bf16 weights for the MXU
        b = b.astype(jnp.float32)            # bias added in f32
        if li == n_layers - 1:
            kout = w.shape[1]
            w = jnp.pad(w, ((0, 0), (0, OUT_PAD - kout)))
            b = jnp.pad(b, ((0, 0), (0, OUT_PAD - kout)))
        flat_params.append(w)
        flat_params.append(b)
        # Tiny constants: pin the whole array in VMEM, no per-step pipelining.
        in_specs.append(pl.BlockSpec(memory_space=pltpu.MemorySpace.VMEM))
        in_specs.append(pl.BlockSpec(memory_space=pltpu.MemorySpace.VMEM))

    out_spec = pl.BlockSpec((tm, OUT_PAD), lambda i: (i, 0))

    out = pl.pallas_call(
        mlp_kernel,
        out_shape=jax.ShapeDtypeStruct((B_pad, OUT_PAD), jnp.float32),
        grid_spec=pltpu.PrefetchScalarGridSpec(
            num_scalar_prefetch=0,
            grid=(grid,),
            in_specs=in_specs,
            out_specs=out_spec,
        ),
        compiler_params=pltpu.CompilerParams(
            dimension_semantics=("parallel",),
            vmem_limit_bytes=48 * 1024 * 1024,  # headroom for big tiles, < v7x 64 MiB
        ),
    )(x_bf16, *flat_params)

    # Drop batch padding and the 126 zero output columns.
    return out[:B, :DIMS[-1]]


def init_params(key):
    """Deterministic init matching nn.Linear shapes (weight stored transposed)."""
    params = []
    for idx in range(len(DIMS) - 1):
        kin, kout = DIMS[idx], DIMS[idx + 1]
        key, kw, kb = jax.random.split(key, 3)
        bound = 1.0 / jnp.sqrt(kin)
        # PyTorch Linear weight is (out, in); we keep (in, out) so kernel does x @ W.
        w = jax.random.uniform(kw, (kin, kout), jnp.float32, -bound, bound)
        b = jax.random.uniform(kb, (1, kout), jnp.float32, -bound, bound)
        params.append((w, b))
    return params


def reference(x, params):
    h = x
    for li, (w, b) in enumerate(params):
        h = h @ w + b
        if li < len(params) - 1:
            h = jnp.maximum(h, 0.0)
    return h


if __name__ == "__main__":
    key = jax.random.PRNGKey(0)
    key, kx = jax.random.split(key)

    B = 8
    x = jax.random.normal(kx, (B, DIMS[0]), jnp.float32)
    params = init_params(key)

    out = feature_linear_layer(x, params, tile_m=1024)
    out = jax.block_until_ready(out)

    ref = reference(x, params)
    assert out.shape == (B, 2)
    # bf16 operands (inputs/weights) -> loosened tolerance vs the f32 reference.
    assert jnp.allclose(out, ref, atol=5e-2, rtol=5e-2), "mismatch vs JAX reference"

    # TODO(synk): training-mode Dropout(p=0.5) not implemented; forward matches eval().
    print("KERNEL_OK")
</pallas_src>

<mosaic_0001>
module attributes {stable_mosaic.version = 11 : i64} {
  func.func @mlp_kernel(%arg0: i32, %arg1: memref<16x256xbf16, #tpu.memory_space<vmem>>, %arg2: memref<256x128xbf16, #tpu.memory_space<vmem>>, %arg3: memref<1x128xf32, #tpu.memory_space<vmem>>, %arg4: memref<128x64xbf16, #tpu.memory_space<vmem>>, %arg5: memref<1x64xf32, #tpu.memory_space<vmem>>, %arg6: memref<64x32xbf16, #tpu.memory_space<vmem>>, %arg7: memref<1x32xf32, #tpu.memory_space<vmem>>, %arg8: memref<32x16xbf16, #tpu.memory_space<vmem>>, %arg9: memref<1x16xf32, #tpu.memory_space<vmem>>, %arg10: memref<16x128xbf16, #tpu.memory_space<vmem>>, %arg11: memref<1x128xf32, #tpu.memory_space<vmem>>, %arg12: memref<16x128xf32, #tpu.memory_space<vmem>>) attributes {dimension_semantics = [#tpu.dimension_semantics<parallel>], iteration_bounds = array<i64: 1>, scalar_prefetch = 0 : i64, scratch_operands = 0 : i64, tpu.core_type = #tpu.core_type<tc>, window_params = [{transform_indices = @transform_0, window_bounds = array<i64: 16, 256>}, {pipeline_mode = #tpu.pipeline_mode<synchronous>, transform_indices = @transform_1, window_bounds = array<i64: 256, 128>}, {pipeline_mode = #tpu.pipeline_mode<synchronous>, transform_indices = @transform_2, window_bounds = array<i64: 1, 128>}, {pipeline_mode = #tpu.pipeline_mode<synchronous>, transform_indices = @transform_3, window_bounds = array<i64: 128, 64>}, {pipeline_mode = #tpu.pipeline_mode<synchronous>, transform_indices = @transform_4, window_bounds = array<i64: 1, 64>}, {pipeline_mode = #tpu.pipeline_mode<synchronous>, transform_indices = @transform_5, window_bounds = array<i64: 64, 32>}, {pipeline_mode = #tpu.pipeline_mode<synchronous>, transform_indices = @transform_6, window_bounds = array<i64: 1, 32>}, {pipeline_mode = #tpu.pipeline_mode<synchronous>, transform_indices = @transform_7, window_bounds = array<i64: 32, 16>}, {pipeline_mode = #tpu.pipeline_mode<synchronous>, transform_indices = @transform_8, window_bounds = array<i64: 1, 16>}, {pipeline_mode = #tpu.pipeline_mode<synchronous>, transform_indices = @transform_9, window_bounds = array<i64: 16, 128>}, {pipeline_mode = #tpu.pipeline_mode<synchronous>, transform_indices = @transform_10, window_bounds = array<i64: 1, 128>}, {transform_indices = @transform_11, window_bounds = array<i64: 16, 128>}]} {
    %c0 = arith.constant 0 : index
    %c0_0 = arith.constant 0 : index
    %0 = vector.load %arg1[%c0, %c0_0] : memref<16x256xbf16, #tpu.memory_space<vmem>>, vector<16x256xbf16>
    %c0_1 = arith.constant 0 : index
    %c0_2 = arith.constant 0 : index
    %1 = vector.load %arg2[%c0_1, %c0_2] : memref<256x128xbf16, #tpu.memory_space<vmem>>, vector<256x128xbf16>
    %cst = arith.constant dense<0.000000e+00> : vector<16x128xf32>
    %2 = tpu.matmul %0, %1, %cst {dimension_numbers = #tpu.dot_dimension_numbers<[1], [0], [0], [1], [0, 0, 1, 1], [], []>} : vector<16x256xbf16>, vector<256x128xbf16>, vector<16x128xf32> -> vector<16x128xf32>
    %c0_3 = arith.constant 0 : index
    %c0_4 = arith.constant 0 : index
    %3 = vector.load %arg3[%c0_3, %c0_4] : memref<1x128xf32, #tpu.memory_space<vmem>>, vector<1x128xf32>
    %4 = vector.broadcast %3 : vector<1x128xf32> to vector<16x128xf32>
    %5 = arith.addf %2, %4 : vector<16x128xf32>
    %cst_5 = arith.constant 0.000000e+00 : f32
    %6 = vector.broadcast %cst_5 : f32 to vector<16x128xf32>
    %7 = arith.maximumf %5, %6 : vector<16x128xf32>
    %8 = arith.truncf %7 : vector<16x128xf32> to vector<16x128xbf16>
    %c0_6 = arith.constant 0 : index
    %c0_7 = arith.constant 0 : index
    %9 = vector.load %arg4[%c0_6, %c0_7] : memref<128x64xbf16, #tpu.memory_space<vmem>>, vector<128x64xbf16>
    %cst_8 = arith.constant dense<0.000000e+00> : vector<16x64xf32>
    %10 = tpu.matmul %8, %9, %cst_8 {dimension_numbers = #tpu.dot_dimension_numbers<[1], [0], [0], [1], [0, 0, 1, 1], [], []>} : vector<16x128xbf16>, vector<128x64xbf16>, vector<16x64xf32> -> vector<16x64xf32>
    %c0_9 = arith.constant 0 : index
    %c0_10 = arith.constant 0 : index
    %11 = vector.load %arg5[%c0_9, %c0_10] : memref<1x64xf32, #tpu.memory_space<vmem>>, vector<1x64xf32>
    %12 = vector.broadcast %11 : vector<1x64xf32> to vector<16x64xf32>
    %13 = arith.addf %10, %12 : vector<16x64xf32>
    %cst_11 = arith.constant 0.000000e+00 : f32
    %14 = vector.broadcast %cst_11 : f32 to vector<16x64xf32>
    %15 = arith.maximumf %13, %14 : vector<16x64xf32>
    %16 = arith.truncf %15 : vector<16x64xf32> to vector<16x64xbf16>
    %c0_12 = arith.constant 0 : index
    %c0_13 = arith.constant 0 : index
    %17 = vector.load %arg6[%c0_12, %c0_13] : memref<64x32xbf16, #tpu.memory_space<vmem>>, vector<64x32xbf16>
    %cst_14 = arith.constant dense<0.000000e+00> : vector<16x32xf32>
    %18 = tpu.matmul %16, %17, %cst_14 {dimension_numbers = #tpu.dot_dimension_numbers<[1], [0], [0], [1], [0, 0, 1, 1], [], []>} : vector<16x64xbf16>, vector<64x32xbf16>, vector<16x32xf32> -> vector<16x32xf32>
    %c0_15 = arith.constant 0 : index
    %c0_16 = arith.constant 0 : index
    %19 = vector.load %arg7[%c0_15, %c0_16] : memref<1x32xf32, #tpu.memory_space<vmem>>, vector<1x32xf32>
    %20 = vector.broadcast %19 : vector<1x32xf32> to vector<16x32xf32>
    %21 = arith.addf %18, %20 : vector<16x32xf32>
    %cst_17 = arith.constant 0.000000e+00 : f32
    %22 = vector.broadcast %cst_17 : f32 to vector<16x32xf32>
    %23 = arith.maximumf %21, %22 : vector<16x32xf32>
    %24 = arith.truncf %23 : vector<16x32xf32> to vector<16x32xbf16>
    %c0_18 = arith.constant 0 : index
    %c0_19 = arith.constant 0 : index
    %25 = vector.load %arg8[%c0_18, %c0_19] : memref<32x16xbf16, #tpu.memory_space<vmem>>, vector<32x16xbf16>
    %cst_20 = arith.constant dense<0.000000e+00> : vector<16x16xf32>
    %26 = tpu.matmul %24, %25, %cst_20 {dimension_numbers = #tpu.dot_dimension_numbers<[1], [0], [0], [1], [0, 0, 1, 1], [], []>} : vector<16x32xbf16>, vector<32x16xbf16>, vector<16x16xf32> -> vector<16x16xf32>
    %c0_21 = arith.constant 0 : index
    %c0_22 = arith.constant 0 : index
    %27 = vector.load %arg9[%c0_21, %c0_22] : memref<1x16xf32, #tpu.memory_space<vmem>>, vector<1x16xf32>
    %28 = vector.broadcast %27 : vector<1x16xf32> to vector<16x16xf32>
    %29 = arith.addf %26, %28 : vector<16x16xf32>
    %cst_23 = arith.constant 0.000000e+00 : f32
    %30 = vector.broadcast %cst_23 : f32 to vector<16x16xf32>
    %31 = arith.maximumf %29, %30 : vector<16x16xf32>
    %32 = arith.truncf %31 : vector<16x16xf32> to vector<16x16xbf16>
    %c0_24 = arith.constant 0 : index
    %c0_25 = arith.constant 0 : index
    %33 = vector.load %arg10[%c0_24, %c0_25] : memref<16x128xbf16, #tpu.memory_space<vmem>>, vector<16x128xbf16>
    %cst_26 = arith.constant dense<0.000000e+00> : vector<16x128xf32>
    %34 = tpu.matmul %32, %33, %cst_26 {dimension_numbers = #tpu.dot_dimension_numbers<[1], [0], [0], [1], [0, 0, 1, 1], [], []>} : vector<16x16xbf16>, vector<16x128xbf16>, vector<16x128xf32> -> vector<16x128xf32>
    %c0_27 = arith.constant 0 : index
    %c0_28 = arith.constant 0 : index
    %35 = vector.load %arg11[%c0_27, %c0_28] : memref<1x128xf32, #tpu.memory_space<vmem>>, vector<1x128xf32>
    %36 = vector.broadcast %35 : vector<1x128xf32> to vector<16x128xf32>
    %37 = arith.addf %34, %36 : vector<16x128xf32>
    %c0_29 = arith.constant 0 : index
    %c0_30 = arith.constant 0 : index
    %38 = vector.load %arg12[%c0_29, %c0_30] : memref<16x128xf32, #tpu.memory_space<vmem>>, vector<16x128xf32>
    tpu.vector_store %arg12[%c0_29, %c0_30], %37 {strides = array<i32>} : memref<16x128xf32, #tpu.memory_space<vmem>>, vector<16x128xf32>,
    return
  }
  func.func @transform_0(%arg0: i32) -> (i32, i32) {
    %c0_i32 = arith.constant 0 : i32
    %c0_i32_0 = arith.constant 0 : i32
    return %arg0, %c0_i32 : i32, i32
  }
  func.func @transform_1(%arg0: i32) -> (i32, i32) {
    %c0_i32 = arith.constant 0 : i32
    %c0_i32_0 = arith.constant 0 : i32
    %c0_i32_1 = arith.constant 0 : i32
    return %c0_i32, %c0_i32_0 : i32, i32
  }
  func.func @transform_2(%arg0: i32) -> (i32, i32) {
    %c0_i32 = arith.constant 0 : i32
    %c0_i32_0 = arith.constant 0 : i32
    %c0_i32_1 = arith.constant 0 : i32
    return %c0_i32, %c0_i32_0 : i32, i32
  }
  func.func @transform_3(%arg0: i32) -> (i32, i32) {
    %c0_i32 = arith.constant 0 : i32
    %c0_i32_0 = arith.constant 0 : i32
    %c0_i32_1 = arith.constant 0 : i32
    return %c0_i32, %c0_i32_0 : i32, i32
  }
  func.func @transform_4(%arg0: i32) -> (i32, i32) {
    %c0_i32 = arith.constant 0 : i32
    %c0_i32_0 = arith.constant 0 : i32
    %c0_i32_1 = arith.constant 0 : i32
    return %c0_i32, %c0_i32_0 : i32, i32
  }
  func.func @transform_5(%arg0: i32) -> (i32, i32) {
    %c0_i32 = arith.constant 0 : i32
    %c0_i32_0 = arith.constant 0 : i32
    %c0_i32_1 = arith.constant 0 : i32
    return %c0_i32, %c0_i32_0 : i32, i32
  }
  func.func @transform_6(%arg0: i32) -> (i32, i32) {
    %c0_i32 = arith.constant 0 : i32
    %c0_i32_0 = arith.constant 0 : i32
    %c0_i32_1 = arith.constant 0 : i32
    return %c0_i32, %c0_i32_0 : i32, i32
  }
  func.func @transform_7(%arg0: i32) -> (i32, i32) {
    %c0_i32 = arith.constant 0 : i32
    %c0_i32_0 = arith.constant 0 : i32
    %c0_i32_1 = arith.constant 0 : i32
    return %c0_i32, %c0_i32_0 : i32, i32
  }
  func.func @transform_8(%arg0: i32) -> (i32, i32) {
    %c0_i32 = arith.constant 0 : i32
    %c0_i32_0 = arith.constant 0 : i32
    %c0_i32_1 = arith.constant 0 : i32
    return %c0_i32, %c0_i32_0 : i32, i32
  }
  func.func @transform_9(%arg0: i32) -> (i32, i32) {
    %c0_i32 = arith.constant 0 : i32
    %c0_i32_0 = arith.constant 0 : i32
    %c0_i32_1 = arith.constant 0 : i32
    return %c0_i32, %c0_i32_0 : i32, i32
  }
  func.func @transform_10(%arg0: i32) -> (i32, i32) {
    %c0_i32 = arith.constant 0 : i32
    %c0_i32_0 = arith.constant 0 : i32
    %c0_i32_1 = arith.constant 0 : i32
    return %c0_i32, %c0_i32_0 : i32, i32
  }
  func.func @transform_11(%arg0: i32) -> (i32, i32) {
    %c0_i32 = arith.constant 0 : i32
    %c0_i32_0 = arith.constant 0 : i32
    return %arg0, %c0_i32 : i32, i32
  }
}

</mosaic_0001>

<bundles_post_ra>
// kernel: tpu_custom_call.1
= control target key start
LH: loop header
LB: loop body
LE: loop exit
PB: predicated region body
PF: predicated region fallthrough
CT: control target
= control target key end

     0   :  { %16 = vsyncpa [#allocation3], 0  ;;  %s1094_s0 = inlined_call_operand.hbm [shape: bf16[16,256], index: 0, kind: input, shape index: {}]   ;;  %s1095_s1 = inlined_call_operand.vmem [shape: bf16[256,128], index: 1, kind: input, shape index: {}]   ;;  %s1096_s2 = inlined_call_operand.vmem [shape: f32[1,128], index: 2, kind: input, shape index: {}]   ;;  %s1097_s3 = inlined_call_operand.vmem [shape: bf16[128,64], index: 3, kind: input, shape index: {}]   ;;  %s1098_s4 = inlined_call_operand.hbm [shape: f32[1,64], index: 4, kind: input, shape index: {}]   ;;  %s1099_s5 = inlined_call_operand.vmem [shape: bf16[64,32], index: 5, kind: input, shape index: {}]   ;;  %s1100_s6 = inlined_call_operand.vmem [shape: f32[1,32], index: 6, kind: input, shape index: {}]   ;;  %s1101_s7 = inlined_call_operand.vmem [shape: bf16[32,16], index: 7, kind: input, shape index: {}]   ;;  %s1102_s8 = inlined_call_operand.vmem [shape: f32[1,16], index: 8, kind: input, shape index: {}]   ;;  %s1103_s9 = inlined_call_operand.hbm [shape: bf16[16,128], index: 9, kind: input, shape index: {}]   ;;  %s1104_s10 = inlined_call_operand.vmem [shape: f32[1,128], index: 10, kind: input, shape index: {}]   ;;  %s1105_s11 = inlined_call_operand.hbm [shape: f32[16,128], index: 11, kind: output, shape index: {}]  }
   0x1   :  { %17 = vsyncpa [#allocation6], 0 }
   0x2   :  { %18 = vsyncpa [#allocation4], 0  ;;  %s881_s17 = smov [#allocation5]   ;;  %s882_s19 = smov [#allocation2]  }
   0x3   :  { %s43_s18 = sshll.u32 %s881_s17, 4  ;;  %s24_s20 = sshll.u32 %s882_s19, 4  ;;  %s44_s18 = int_to_ptr.vmem [resolvable:$true] %s43_s18  ;;  %s25_s20 = int_to_ptr.vmem [resolvable:$true] %s24_s20 }
   0x4   :  { %s803_s21 = scalar_lea.vmem %s44_s18, 16  ;;  %s807_s22 = scalar_lea.vmem %s44_s18, 32 }
   0x5   :  { %p804_p0 = scmp.ne.s32.totalorder %s44_s18, %s803_s21  ;;  %p808_p1 = scmp.lt.s32.totalorder %s44_s18, %s44_s18 }
   0x6   :  { %p809_p2 = scmp.lt.s32.totalorder %s807_s22, %s803_s21 }
   0x8   :  { %p810_p3 = por %p809_p2, %p808_p1 }
   0xa   :  { %p811_p4 = pnand %p810_p3, %p804_p0 }
   0xc   :  { %814 = shalt.err (!%p811_p4)
}
   0xd   :  { %46 = dma.hbm_to_vmem [thread:$0]  %s1098_s4, 16, %s44_s18, [#allocation6]  }
   0xe   :  { %s823_s25 = scalar_lea.vmem %s25_s20, 256  ;;  %p828_p6 = scmp.lt.s32.totalorder %s25_s20, %s25_s20 }
   0xf   :  { %p824_p5 = scmp.ne.s32.totalorder %s25_s20, %s823_s25  ;;  %p829_p7 = scmp.lt.s32.totalorder %s823_s25, %s823_s25 }
  0x11   :  { %p830_p8 = por %p829_p7, %p828_p6 }
  0x13   :  { %p831_p9 = pnand %p830_p8, %p824_p5 }
  0x15   :  { %834 = shalt.err (!%p831_p9)
}
  0x16   :  { %s883_s26 = smov 128   ;;  %s884_s27 = smov 8  }
  0x17   :  { %30 = dma.hbm_to_vmem [thread:$0]  %s1094_s0, 256, %s25_s20, [#allocation3], %s883_s26, %s883_s26, %s884_s27  }
  0x18   :  { %s885_s30 = smov [#allocation7]  }
  0x19   :  { %s60_s12 = sshll.u32 %s885_s30, 4  ;;  %s61_s12 = int_to_ptr.vmem [resolvable:$true] %s60_s12 }
  0x1a   :  { %s843_s4 = scalar_lea.vmem %s61_s12, 128  ;;  %p848_p11 = scmp.lt.s32.totalorder %s61_s12, %s61_s12 }
  0x1b   :  { %p844_p10 = scmp.ne.s32.totalorder %s61_s12, %s843_s4  ;;  %p849_p12 = scmp.lt.s32.totalorder %s843_s4, %s843_s4 }
  0x1d   :  { %p850_p13 = por %p849_p12, %p848_p11 }
  0x1f   :  { %p851_p0 = pnand %p850_p13, %p844_p10 }
  0x21   :  { %854 = shalt.err (!%p851_p0)
}
  0x22   :  { %s886_s13 = smov 64   ;;  %s887_s14 = smov 4  }
  0x23   :  { %66 = dma.hbm_to_vmem [thread:$0]  %s1103_s9, 128, %s61_s12, [#allocation6], %s886_s13, %s886_s13, %s887_s14  }
  0x24   :  { %875 = dma.done.wait [#allocation3], 256  }
  0x25   :  { %876 = vsyncadd [#allocation3], 4294967040 }
  0x26   :  { %877 = dma.done.wait [#allocation6], 144  }
  0x27   :  { %878 = vsyncadd [#allocation6], 4294967152  ;;  %v888_v0 = vmov 0.0   ;;  %v761_v1 = vld [vmem:[%s1095_s1 + $0x78] sm:$0xff]   ;;  %v763_v3 = vld [vmem:[%s1095_s1 + $0x70] sm:$0xff]   ;;  %vm889_vm0 = vmmov 0  }
  0x28   :  { %705 = vmatprep.subr.bf16.mxu1 %v888_v0  ;;  %v762_v2 = vld [vmem:[%s1095_s1 + $0x38] sm:$0xff]   ;;  %664 = vmatprep.subr.bf16.mxu0 %v761_v1  ;;  %v764_v4 = vld [vmem:[%s1095_s1 + $0x30] sm:$0xff]   ;;  %v765_v5 = vld [vmem:[%s1095_s1 + $0x68] sm:$0xff]   ;;  %vm424_vm1 = vcmask 523264   ;;  %vm495_vm2 = vcmask 261120   ;;  %vm558_vm3 = vcmask 130048  }
  0x29   :  { %665 = vmatpush3.bf16.msra.mxu0 %v762_v2  ;;  %v766_v6 = vld [vmem:[%s1095_s1 + $0x28] sm:$0xff]   ;;  %v767_v7 = vld [vmem:[%s1095_s1 + $0x60] sm:$0xff]   ;;  %v769_v9 = vld [vmem:[%s1095_s1 + $0x58] sm:$0xff]   ;;  %721 = vmatprep.mubr.msk.bf16.mxu1 %vm889_vm0, %v888_v0  ;;  %s890_s17 = smov [#allocation8]  }
  0x2a   :  { %666 = vmatprep.subr.bf16.mxu0 %v763_v3  ;;  %v768_v8 = vld [vmem:[%s1095_s1 + $0x20] sm:$0xff]   ;;  %v770_v10 = vld [vmem:[%s1095_s1 + $0x18] sm:$0xff]   ;;  %v771_v11 = vld [vmem:[%s1095_s1 + $0x50] sm:$0xff]  }
  0x2b   :  { %v772_v12 = vld [vmem:[%s1095_s1 + $0x10] sm:$0xff]   ;;  %v779_v13 = vld [vmem:[#allocation2 + $0x4] ss:$8 sps:$4 sm:$0xff]   ;;  %v780_v14 = vld [vmem:[%s1097_s3 + $0x38] sm:$0xff]  }
  0x2c   :  { %v773_v15 = vld [vmem:[%s1095_s1 + $0x48] sm:$0xff]   ;;  %258 = vmatprep.mubr.bf16.mxu0 %v779_v13  ;;  %706 = vmatpush3.bf16.msra.mxu1 %v780_v14  ;;  %v781_v16 = vld [vmem:[%s1097_s3 + $0x30] sm:$0xff]   ;;  %v775_v18 = vld [vmem:[%s1095_s1 + $0x40] sm:$0xff]  }
  0x2d   :  { %667 = vmatpush3.bf16.msra.mxu0 %v764_v4  ;;  %v774_v17 = vld [vmem:[%s1095_s1 + $0x8] sm:$0xff]   ;;  %707 = vmatprep.subr.bf16.mxu1 %v888_v0  ;;  %v776_v20 = vld [vmem:[%s1095_s1] sm:$0xff]   ;;  %v784_v23 = vld [vmem:[%s1097_s3 + $0x18] sm:$0xff]  }
  0x2e   :  { %668 = vmatprep.subr.bf16.mxu0 %v765_v5  ;;  %v782_v19 = vld [vmem:[%s1097_s3 + $0x28] sm:$0xff]   ;;  %v783_v21 = vld [vmem:[%s1097_s3 + $0x20] sm:$0xff]   ;;  %v785_v24 = vld [vmem:[%s1097_s3 + $0x10] sm:$0xff]  }
  0x2f   :  { %v777_v22 = vld [vmem:[#allocation2] ss:$8 sps:$4 sm:$0xff]   ;;  %v788_v27 = vld [vmem:[%s1099_s5 + $0x18] sm:$0xff]   ;;  %v789_v40 = vld [vmem:[%s1099_s5 + $0x10] sm:$0xff]  }
  0x30   :  { %708 = vmatpush3.bf16.msra.mxu1 %v781_v16  ;;  %v786_v25 = vld [vmem:[%s1097_s3 + $0x8] sm:$0xff]   ;;  %v787_v26 = vld [vmem:[%s1097_s3] sm:$0xff]   ;;  %v642_v43 = vld [vmem:[#allocation5] ss:$0 sm:$0xff] }
  0x31   :  { %669 = vmatpush3.bf16.msra.mxu0 %v766_v6  ;;  %709 = vmatprep.subr.bf16.mxu1 %v888_v0  ;;  %v623_v31 = vld [vmem:[%s1096_s2] ss:$0 sm:$0xff]  ;;  %v790_v41 = vld [vmem:[%s1099_s5 + $0x8] sm:$0xff]   ;;  %v794_v2 = vld [vmem:[#allocation7] sm:$0xff]  }
  0x32   :  { %670 = vmatprep.subr.bf16.mxu0 %v767_v7  ;;  %v791_v42 = vld [vmem:[%s1099_s5] sm:$0xff]   ;;  %v792_v53 = vld [vmem:[%s1101_s7 + $0x8] sm:$0xff]  }
  0x33   :  { %v793_v54 = vld [vmem:[%s1101_s7] sm:$0xff]  }
  0x34   :  { %710 = vmatpush3.bf16.msra.mxu1 %v782_v19  ;;  %v651_v55 = vld [vmem:[%s1100_s6] ss:$0 sm:$0xff] }
  0x35   :  { %671 = vmatpush3.bf16.msra.mxu0 %v768_v8  ;;  %711 = vmatprep.subr.bf16.mxu1 %v888_v0  ;;  %v657_v3 = vld [vmem:[%s1102_s8] ss:$0 sm:$0xff]  ;;  %s610_s8 = sshll.u32 %s890_s17, 4  ;;  %s611_s8 = int_to_ptr.vmem [resolvable:$true] %s610_s8 }
  0x36   :  { %672 = vmatprep.subr.bf16.mxu0 %v769_v9  ;;  %s855_s18 = scalar_lea.vmem %s611_s8, 256  ;;  %p860_p2 = scmp.lt.s32.totalorder %s611_s8, %s611_s8 }
  0x37   :  { %p856_p1 = scmp.ne.s32.totalorder %s611_s8, %s855_s18  ;;  %p861_p3 = scmp.lt.s32.totalorder %s855_s18, %s855_s18 }
  0x38   :  { %712 = vmatpush3.bf16.msra.mxu1 %v783_v21 }
  0x39   :  { %673 = vmatpush3.bf16.msra.mxu0 %v770_v10  ;;  %713 = vmatprep.subr.bf16.mxu1 %v888_v0  ;;  %p862_p4 = por %p861_p3, %p860_p2 }
  0x3a   :  { %674 = vmatprep.subr.bf16.mxu0 %v771_v11 }
  0x3b   :  { %p863_p5 = pnand %p862_p4, %p856_p1 }
  0x3c   :  { %714 = vmatpush3.bf16.msra.mxu1 %v784_v23 }
  0x3d   :  { %675 = vmatpush3.bf16.msra.mxu0 %v772_v12  ;;  %715 = vmatprep.subr.bf16.mxu1 %v888_v0 }
  0x3e   :  { %676 = vmatprep.subr.bf16.mxu0 %v773_v15 }
  0x40   :  { %716 = vmatpush3.bf16.msra.mxu1 %v785_v24 }
  0x41   :  { %677 = vmatpush3.bf16.msra.mxu0 %v774_v17  ;;  %717 = vmatprep.subr.bf16.mxu1 %v888_v0 }
  0x42   :  { %678 = vmatprep.subr.bf16.mxu0 %v775_v18 }
  0x44   :  { %718 = vmatpush3.bf16.msra.mxu1 %v786_v25 }
  0x45   :  { %679 = vmatpush3.bf16.msra.mxu0 %v776_v20  ;;  %719 = vmatprep.subr.bf16.mxu1 %v888_v0 }
  0x46   :  { %725 = vmatprep.subr.bf16.mxu0 %v888_v0 }
  0x48   :  { %259 = vmatmul.mubr.bf16.vlgmr.msra.gmra.mxu0 %v777_v22  ;;  %720 = vmatpush3.bf16.msra.mxu1 %v787_v26 }
  0x49   :  { %733 = vmatprep.mubr.msk.bf16.mxu0 %vm889_vm0, %v888_v0  ;;  %737 = vmatprep.subr.bf16.mxu1 %v888_v0 }
  0x4a   :  { %726 = vmatpush3.bf16.msra.mxu0 %v788_v27 }
  0x4b   :  { %727 = vmatprep.subr.bf16.mxu0 %v888_v0 }
  0x4e   :  { %728 = vmatpush3.bf16.msra.mxu0 %v789_v40 }
  0x4f   :  { %729 = vmatprep.subr.bf16.mxu0 %v888_v0 }
  0x52   :  { %730 = vmatpush3.bf16.msra.mxu0 %v790_v41 }
  0x53   :  { %731 = vmatprep.subr.bf16.mxu0 %v888_v0 }
  0x56   :  { %732 = vmatpush3.bf16.msra.mxu0 %v791_v42 }
 0x108   :  { %v680_v28 = vpop.f32.mrf.mxu0 }
 0x10a   :  { %v681_v29 = vpop.f32.mrf.mxu0 }
 0x10b   :  { %v682_v30 = vadd.f32 %v681_v29, %v680_v28 }
 0x10c   :  { %v683_v32 = vpop.f32.mrf.mxu0 }
 0x10d   :  { %v261_v34 = vadd.f32 %v682_v30, %v623_v31 }
 0x10e   :  { %v684_v33 = vpop.f32.mrf.mxu0 }
 0x10f   :  { %v685_v35 = vadd.f32 %v684_v33, %v683_v32  ;;  %v267_v37 = vmax.f32 %v261_v34, 0.0 }
 0x111   :  { %v264_v36 = vadd.f32 %v685_v35, %v623_v31 }
 0x113   :  { %v268_v38 = vmax.f32 %v264_v36, 0.0 }
 0x115   :  { %v269_v39 = vpack.c.bf16 %v268_v38, %v267_v37 }
 0x117   :  { %722 = vmatmul.mubr.bf16.vlgmr.msra.gmra.mxu1 %v269_v39 }
 0x118   :  { %741 = vmatprep.mubr.msk.bf16.mxu1 %vm889_vm0, %v888_v0  ;;  %738 = vmatpush3.bf16.msra.mxu1 %v792_v53 }
 0x119   :  { %739 = vmatprep.subr.bf16.mxu1 %v888_v0 }
 0x11c   :  { %740 = vmatpush3.bf16.msra.mxu1 %v793_v54 }
 0x11d   :  { %745 = vmatprep.subr.bf16.mxu1 %v888_v0 }
 0x1d7   :  { %v375_v44 = vpop.f32.mrf.mxu1 }
 0x1d8   :  { %v376_v46 = vadd.f32 %v642_v43, %v375_v44 }
 0x1d9   :  { %v723_v45 = vpop.f32.mrf.mxu1 }
 0x1da   :  { %v382_v50 = vmax.f32 %v376_v46, 0.0 }
 0x1db   :  { %v378_v47 = vpop.f32.mrf.mxu1 }
 0x1dc   :  { %v379_v48 = vadd.f32 %v642_v43, %v378_v47 }
 0x1dd   :  { %v724_v49 = vpop.f32.mrf.mxu1 }
 0x1de   :  { %v383_v51 = vmax.f32 %v379_v48, 0.0 }
 0x1e0   :  { %v384_v52 = vpack.c.bf16 %v383_v51, %v382_v50 }
 0x1e2   :  { %734 = vmatmul.mubr.msk.bf16.vlgmr.msra.gmra.mxu0 %vm424_vm1, %v384_v52 }
 0x2a2   :  { %v462_v56 = vpop.f32.mrf.mxu0 }
 0x2a3   :  { %v463_v58 = vadd.f32 %v651_v55, %v462_v56 }
 0x2a4   :  { %v735_v57 = vpop.f32.mrf.mxu0 }
 0x2a5   :  { %v469_v62 = vmax.f32 %v463_v58, 0.0 }
 0x2a6   :  { %v465_v59 = vpop.f32.mrf.mxu0 }
 0x2a7   :  { %v466_v60 = vadd.f32 %v651_v55, %v465_v59 }
 0x2a8   :  { %v736_v61 = vpop.f32.mrf.mxu0 }
 0x2a9   :  { %v470_v63 = vmax.f32 %v466_v60, 0.0 }
 0x2ab   :  { %v471_v1 = vpack.c.bf16 %v470_v63, %v469_v62 }
 0x2ad   :  { %742 = vmatmul.mubr.msk.bf16.vlgmr.msra.gmra.mxu1 %vm495_vm2, %v471_v1 }
 0x2ae   :  { %747 = vmatprep.mubr.msk.bf16.mxu1 %vm889_vm0, %v888_v0  ;;  %746 = vmatpush3.bf16.msra.mxu1 %v794_v2  ;;  %v661_v0 = vld [vmem:[%s1104_s10] ss:$0 sm:$0xff] }
 0x36d   :  { %v533_v4 = vpop.f32.mrf.mxu1 }
 0x36e   :  { %v534_v6 = vadd.f32 %v657_v3, %v533_v4 }
 0x36f   :  { %v743_v5 = vpop.f32.mrf.mxu1 }
 0x370   :  { %v540_v10 = vmax.f32 %v534_v6, 0.0 }
 0x371   :  { %v536_v7 = vpop.f32.mrf.mxu1 }
 0x372   :  { %v537_v8 = vadd.f32 %v657_v3, %v536_v7 }
 0x373   :  { %v744_v9 = vpop.f32.mrf.mxu1 }
 0x374   :  { %v541_v11 = vmax.f32 %v537_v8, 0.0 }
 0x376   :  { %v542_v12 = vpack.c.bf16 %v541_v11, %v540_v10 }
 0x378   :  { %748 = vmatmul.mubr.msk.bf16.vlgmr.msra.gmra.mxu1 %vm558_vm3, %v542_v12 }
 0x438   :  { %v596_v13 = vpop.f32.mrf.mxu1 }
 0x439   :  { %v597_v14 = vadd.f32 %v661_v0, %v596_v13 }
 0x43a   :  { %v749_v15 = vpop.f32.mrf.mxu1 }
 0x43b   :  { %603 = vst [vmem:[#allocation8] sm:$0xff] %v597_v14 }
 0x43c   :  { %v599_v16 = vpop.f32.mrf.mxu1 }
 0x43d   :  { %v600_v17 = vadd.f32 %v661_v0, %v599_v16 }
 0x43e   :  { %v750_v18 = vpop.f32.mrf.mxu1 }
 0x43f   :  { %604 = vst [vmem:[#allocation8 + $0x8] sm:$0xff] %v600_v17 }
 0x440   :  { %866 = shalt.err (!%p863_p5)
}
 0x441   :  { %616 = dma.vmem_to_hbm [thread:$0]  %s611_s8, 256, %s1105_s11, [#allocation4], %s883_s26, %s883_s26, %s884_s27  }
 0x442   :  { %879 = dma.done.wait [#allocation4], 256  }
 0x443   :  { %880 = vsyncadd [#allocation4], 4294967040 }
 0x444   :  { %620 = vsyncpa [#allocation3], 1 }
 0x445   :  { %621 = vsyncpa [#allocation6], 1 }
 0x446   :  { %622 = vsyncpa [#allocation4], 1 }

</bundles_post_ra>
